<compile_context>
chip_gen: v5e
topology: v5e:2x2
jax: 0.10.0
libtpu: 0.0.40
codegen_flags: <defaults>
</compile_context>

<pallas_src>
import functools

import jax
import jax.numpy as jnp
from jax.experimental import pallas as pl
from jax.experimental.pallas import tpu as pltpu


# --------------------------------------------------------------------------- helpers
def _cdiv(a: int, b: int) -> int:
    return -(-a // b)


def _round_up(x: int, m: int) -> int:
    return _cdiv(x, m) * m


def _sublane_granularity(dtype) -> int:
    # Native sublane tile: 8 rows for 4-byte, 16 for 2-byte, 32 for 1-byte dtypes.
    return max(8, 32 // jnp.dtype(dtype).itemsize)


def _balanced_tile(dim: int, max_tile: int, gran: int) -> int:
    """Largest tile <= ~max_tile that splits `dim` with minimal padding waste."""
    steps = max(1, _cdiv(dim, max_tile))
    return _round_up(_cdiv(dim, steps), gran)


@functools.lru_cache(maxsize=1)
def _vmem_capacity_bytes() -> int:
    try:
        info = pltpu.get_tpu_info()
        for name in ("vmem_capacity_bytes", "vmem_size_bytes", "vmem_bytes"):
            v = getattr(info, name, None)
            if v:
                return int(v)
    except Exception:
        pass
    return 64 * 1024 * 1024  # conservative fallback (v7x per-TC VMEM)


# --------------------------------------------------------------------------- kernels
def _matmul_kernel_acc(x_ref, w_ref, o_ref, acc_ref):
    """(tm, tn) output tile, accumulating over the K grid axis (axis 2)."""
    k = pl.program_id(2)
    prod = jnp.dot(x_ref[...], w_ref[...], preferred_element_type=jnp.float32)

    @pl.when(k == 0)
    def _():
        acc_ref[...] = prod            # assign on first step (no zero + add)

    @pl.when(k > 0)
    def _():
        acc_ref[...] += prod

    @pl.when(k == pl.num_programs(2) - 1)
    def _():
        o_ref[...] = acc_ref[...].astype(o_ref.dtype)


def _matmul_kernel_single(x_ref, w_ref, o_ref):
    """Single K step: no scratch, write the output tile directly."""
    o_ref[...] = jnp.dot(
        x_ref[...], w_ref[...], preferred_element_type=jnp.float32
    ).astype(o_ref.dtype)


# --------------------------------------------------------------------------- wrapper
@functools.partial(jax.jit, static_argnames=("tm", "tn", "tk", "mxu_dtype"))
def linear_forward_t(x, Wt, *, tm=None, tn=None, tk=None, mxu_dtype=None):
    """y[..., n] = sum_k x[..., k] * Wt[k, n]   (Wt is the pre-transposed weight)."""
    K, N = Wt.shape
    assert x.shape[-1] == K
    lead = x.shape[:-1]
    out_dtype = jnp.result_type(x.dtype, Wt.dtype)

    x2d = x.reshape(-1, K)
    M = x2d.shape[0]

    if mxu_dtype is not None:                       # optional bf16 MXU path
        x2d = x2d.astype(mxu_dtype)
        Wt = Wt.astype(mxu_dtype)

    # ---- generation-aware defaults --------------------------------------------
    vmem = _vmem_capacity_bytes()
    big_vmem = vmem >= 96 * 1024 * 1024             # v5e / v6e (128 MiB); v7x: 64 MiB/TC
    if tm is None:
        tm = 512
    if tn is None:
        tn = 512
    if tk is None:
        tk = 2048 if big_vmem else 1024
    vmem_limit = (100 if big_vmem else 44) * 1024 * 1024

    # ---- balanced tiles (minimal padding waste) --------------------------------
    m_gran = max(_sublane_granularity(x2d.dtype), _sublane_granularity(out_dtype))
    tm_ = _balanced_tile(M, tm, m_gran)
    tn_ = _balanced_tile(N, tn, 128)
    tk_ = _balanced_tile(K, tk, 128)

    mt = _cdiv(M, tm_)
    nt = _cdiv(N, tn_)

    # v7x has 2 TensorCores that shard only parallel grid axes: guarantee >= 2 blocks.
    if (not big_vmem) and mt == 1 and nt == 1 and _round_up(N, 128) >= 256:
        tn_ = _round_up(_cdiv(N, 2), 128)
        nt = _cdiv(N, tn_)

    kt = _cdiv(K, tk_)
    Kp = kt * tk_

    # Only K needs zero fill for a correct contraction; M/N raggedness is handled
    # by Pallas edge-block masking (OOB writes dropped, OOB reads only feed dropped rows/cols).
    if Kp != K:
        x2d = jnp.pad(x2d, ((0, 0), (0, Kp - K)))
        Wt = jnp.pad(Wt, ((0, Kp - K), (0, 0)))

    cost = pl.CostEstimate(
        flops=2 * M * N * K,
        transcendentals=0,
        bytes_accessed=(
            M * K * jnp.dtype(x2d.dtype).itemsize
            + K * N * jnp.dtype(Wt.dtype).itemsize
            + M * N * jnp.dtype(out_dtype).itemsize
        ),
    )

    if kt == 1:
        y2d = pl.pallas_call(
            _matmul_kernel_single,
            out_shape=jax.ShapeDtypeStruct((M, N), out_dtype),
            grid_spec=pltpu.PrefetchScalarGridSpec(
                num_scalar_prefetch=0,
                grid=(mt, nt),
                in_specs=[
                    pl.BlockSpec((tm_, tk_), lambda i, j: (i, 0)),   # x tile
                    pl.BlockSpec((tk_, tn_), lambda i, j: (0, j)),   # W^T tile
                ],
                out_specs=pl.BlockSpec((tm_, tn_), lambda i, j: (i, j)),
            ),
            compiler_params=pltpu.CompilerParams(
                dimension_semantics=("parallel", "parallel"),
                vmem_limit_bytes=vmem_limit,
            ),
            cost_estimate=cost,
        )(x2d, Wt)
    else:
        y2d = pl.pallas_call(
            _matmul_kernel_acc,
            out_shape=jax.ShapeDtypeStruct((M, N), out_dtype),
            grid_spec=pltpu.PrefetchScalarGridSpec(
                num_scalar_prefetch=0,
                grid=(mt, nt, kt),
                in_specs=[
                    pl.BlockSpec((tm_, tk_), lambda i, j, k: (i, k)),  # x tile
                    pl.BlockSpec((tk_, tn_), lambda i, j, k: (k, j)),  # W^T tile
                ],
                out_specs=pl.BlockSpec((tm_, tn_), lambda i, j, k: (i, j)),
                scratch_shapes=[pltpu.VMEM((tm_, tn_), jnp.float32)],
            ),
            compiler_params=pltpu.CompilerParams(
                dimension_semantics=("parallel", "parallel", "arbitrary"),
                vmem_limit_bytes=vmem_limit,
            ),
            cost_estimate=cost,
        )(x2d, Wt)

    return y2d.reshape(*lead, N)


def prepare_weight(W):
    """Transpose the (out_features, in_features) torch-layout weight ONCE to (K, N)."""
    return jnp.swapaxes(jnp.asarray(W), 0, 1)


class Linear:
    """Pallas equivalent of the torch `Linear` module (y = x @ W^T, no bias)."""

    def __init__(self, in_features, out_features, *, key, dtype=jnp.float32):
        self.in_dim = in_features
        self.out_dim = out_features
        # torch.nn.init.trunc_normal_ defaults: mean=0, std=1, truncated to [-2, 2].
        W = jax.random.truncated_normal(
            key, -2.0, 2.0, (out_features, in_features), dtype=dtype
        )
        self.Wt = prepare_weight(W)          # stored pre-transposed: (K, N)

    def update_weight(self, new_weight):
        assert new_weight.shape == (self.out_dim, self.in_dim)
        self.Wt = prepare_weight(new_weight)

    def __call__(self, x):
        assert x.shape[-1] == self.in_dim
        return linear_forward_t(x, self.Wt)


# --------------------------------------------------------------------------- demo/test
if __name__ == "__main__":
    key = jax.random.PRNGKey(0)
    k1, k2, k3, kx1, kx2, kx3 = jax.random.split(key, 6)

    # 1) Small case matching the module's "... in -> ... out".
    lin = Linear(32, 64, key=k1)
    x = jax.random.normal(kx1, (2, 8, 32), dtype=jnp.float32)
    y = jax.block_until_ready(lin(x))
    y_ref = jnp.einsum("oi,bsi->bso", jnp.swapaxes(lin.Wt, 0, 1), x)
    assert y.shape == (2, 8, 64)
    assert jnp.allclose(y, y_ref, atol=1e-3, rtol=1e-3)

    # 2) Ragged M / N / K: exercises edge-block masking and K zero-padding.
    lin2 = Linear(48, 80, key=k2)
    x2 = jax.random.normal(kx2, (3, 5, 48), dtype=jnp.float32)
    y2 = jax.block_until_ready(lin2(x2))
    y2_ref = jnp.einsum("oi,bsi->bso", jnp.swapaxes(lin2.Wt, 0, 1), x2)
    assert y2.shape == (3, 5, 80)
    assert jnp.allclose(y2, y2_ref, atol=1e-3, rtol=1e-3)

    # 3) Multi-K-step accumulator path (force small tiles to get kt > 1).
    lin3 = Linear(384, 256, key=k3)
    x3 = jax.random.normal(kx3, (4, 64, 384), dtype=jnp.float32)
    y3 = jax.block_until_ready(linear_forward_t(x3, lin3.Wt, tm=128, tn=128, tk=128))
    y3_ref = jnp.einsum("oi,bsi->bso", jnp.swapaxes(lin3.Wt, 0, 1), x3)
    assert y3.shape == (4, 64, 256)
    assert jnp.allclose(y3, y3_ref, atol=2e-3, rtol=2e-3)

    print("KERNEL_OK")
</pallas_src>

<mosaic_0001>
module attributes {stable_mosaic.version = 11 : i64} {
  func.func @_matmul_kernel_single(%arg0: i32, %arg1: i32, %arg2: memref<16x128xf32, #tpu.memory_space<vmem>>, %arg3: memref<128x128xf32, #tpu.memory_space<vmem>>, %arg4: memref<16x128xf32, #tpu.memory_space<vmem>>) attributes {dimension_semantics = [#tpu.dimension_semantics<parallel>, #tpu.dimension_semantics<parallel>], iteration_bounds = array<i64: 1, 1>, scalar_prefetch = 0 : i64, scratch_operands = 0 : i64, tpu.core_type = #tpu.core_type<tc>, window_params = [{transform_indices = @transform_0, window_bounds = array<i64: 16, 128>}, {transform_indices = @transform_1, window_bounds = array<i64: 128, 128>}, {transform_indices = @transform_2, window_bounds = array<i64: 16, 128>}]} {
    %c0 = arith.constant 0 : index
    %c0_0 = arith.constant 0 : index
    %0 = vector.load %arg2[%c0, %c0_0] : memref<16x128xf32, #tpu.memory_space<vmem>>, vector<16x128xf32>
    %c0_1 = arith.constant 0 : index
    %c0_2 = arith.constant 0 : index
    %1 = vector.load %arg3[%c0_1, %c0_2] : memref<128x128xf32, #tpu.memory_space<vmem>>, vector<128x128xf32>
    %cst = arith.constant dense<0.000000e+00> : vector<16x128xf32>
    %2 = tpu.matmul %0, %1, %cst {dimension_numbers = #tpu.dot_dimension_numbers<[1], [0], [0], [1], [0, 0, 1, 1], [], []>} : vector<16x128xf32>, vector<128x128xf32>, vector<16x128xf32> -> vector<16x128xf32>
    %c0_3 = arith.constant 0 : index
    %c0_4 = arith.constant 0 : index
    %3 = vector.load %arg4[%c0_3, %c0_4] : memref<16x128xf32, #tpu.memory_space<vmem>>, vector<16x128xf32>
    tpu.vector_store %arg4[%c0_3, %c0_4], %2 {strides = array<i32>} : memref<16x128xf32, #tpu.memory_space<vmem>>, vector<16x128xf32>,
    return
  }
  func.func @transform_0(%arg0: i32, %arg1: i32) -> (i32, i32) {
    %c0_i32 = arith.constant 0 : i32
    %c0_i32_0 = arith.constant 0 : i32
    return %arg0, %c0_i32 : i32, i32
  }
  func.func @transform_1(%arg0: i32, %arg1: i32) -> (i32, i32) {
    %c0_i32 = arith.constant 0 : i32
    %c0_i32_0 = arith.constant 0 : i32
    return %c0_i32, %arg1 : i32, i32
  }
  func.func @transform_2(%arg0: i32, %arg1: i32) -> (i32, i32) {
    %c0_i32 = arith.constant 0 : i32
    return %arg0, %arg1 : i32, i32
  }
}

</mosaic_0001>

<bundles_post_ra>
// kernel: linear_forward_t.1
= control target key start
LH: loop header
LB: loop body
LE: loop exit
PB: predicated region body
PF: predicated region fallthrough
CT: control target
= control target key end

     0   :  { %s193_s0 = inlined_call_operand.vmem [shape: f32[16,128], index: 0, kind: input, shape index: {}]   ;;  %s194_s1 = inlined_call_operand.vmem [shape: f32[128,64], index: 1, kind: input, shape index: {}]   ;;  %s195_s2 = inlined_call_operand.hbm [shape: f32[16,64], index: 2, kind: output, shape index: {}]  }
   0x1   :  { %v29_v0 = vld [vmem:[%s194_s1 + $0x78] sm:$0xff]  ;;  %v28_v1 = vld [vmem:[%s194_s1 + $0x70] sm:$0xff]  ;;  %v27_v2 = vld [vmem:[%s194_s1 + $0x68] sm:$0xff] }
   0x2   :  { %30 = vmatpush.msra.mxu0 %v29_v0  ;;  %73 = vmatpush.msra.mxu1 %v29_v0  ;;  %v26_v3 = vld [vmem:[%s194_s1 + $0x60] sm:$0xff]  ;;  %v25_v4 = vld [vmem:[%s194_s1 + $0x58] sm:$0xff] }
   0x4   :  { %31 = vmatpush.msra.mxu0 %v28_v1  ;;  %74 = vmatpush.msra.mxu1 %v28_v1 }
   0x6   :  { %32 = vmatpush.msra.mxu0 %v27_v2  ;;  %75 = vmatpush.msra.mxu1 %v27_v2 }
   0x7   :  { %7 = vsyncpa [#allocation3], 0  ;;  %v24_v5 = vld [vmem:[%s194_s1 + $0x50] sm:$0xff]  ;;  %v23_v6 = vld [vmem:[%s194_s1 + $0x48] sm:$0xff]  ;;  %s118_s17 = smov [#allocation2]   ;;  %s119_s21 = smov 128  }
   0x8   :  { %33 = vmatpush.msra.mxu0 %v26_v3  ;;  %76 = vmatpush.msra.mxu1 %v26_v3  ;;  %v22_v7 = vld [vmem:[%s194_s1 + $0x40] sm:$0xff]  ;;  %v21_v8 = vld [vmem:[%s194_s1 + $0x38] sm:$0xff]  ;;  %v20_v9 = vld [vmem:[%s194_s1 + $0x30] sm:$0xff]  ;;  %s59_s18 = sshll.u32 %s118_s17, 4  ;;  %s120_s22 = smov 8   ;;  %s60_s18 = int_to_ptr.vmem [resolvable:$true] %s59_s18 }
   0x9   :  { %v19_v10 = vld [vmem:[%s194_s1 + $0x28] sm:$0xff]  ;;  %v18_v11 = vld [vmem:[%s194_s1 + $0x20] sm:$0xff]  ;;  %v17_v12 = vld [vmem:[%s194_s1 + $0x18] sm:$0xff] }
   0xa   :  { %34 = vmatpush.msra.mxu0 %v25_v4  ;;  %77 = vmatpush.msra.mxu1 %v25_v4  ;;  %v16_v13 = vld [vmem:[%s194_s1 + $0x10] sm:$0xff]  ;;  %v15_v14 = vld [vmem:[%s194_s1 + $0x8] sm:$0xff]  ;;  %v14_v15 = vld [vmem:[%s194_s1] sm:$0xff]  ;;  %s61_s1 = sshll.u32 %s195_s2, 4  ;;  %s62_s1 = int_to_ptr.hbm [resolvable:$true] %s61_s1 }
   0xb   :  { %v12_v16 = vld [vmem:[%s193_s0] sm:$0xff]  ;;  %v13_v17 = vld [vmem:[%s193_s0 + $0x8] sm:$0xff] }
   0xc   :  { %35 = vmatpush.msra.mxu0 %v24_v5  ;;  %78 = vmatpush.msra.mxu1 %v24_v5 }
   0xe   :  { %36 = vmatpush.msra.mxu0 %v23_v6  ;;  %79 = vmatpush.msra.mxu1 %v23_v6 }
  0x10   :  { %37 = vmatpush.msra.mxu0 %v22_v7  ;;  %80 = vmatpush.msra.mxu1 %v22_v7 }
  0x12   :  { %38 = vmatpush.msra.mxu0 %v21_v8  ;;  %81 = vmatpush.msra.mxu1 %v21_v8 }
  0x14   :  { %39 = vmatpush.msra.mxu0 %v20_v9  ;;  %82 = vmatpush.msra.mxu1 %v20_v9 }
  0x16   :  { %40 = vmatpush.msra.mxu0 %v19_v10  ;;  %83 = vmatpush.msra.mxu1 %v19_v10 }
  0x18   :  { %41 = vmatpush.msra.mxu0 %v18_v11  ;;  %84 = vmatpush.msra.mxu1 %v18_v11 }
  0x1a   :  { %42 = vmatpush.msra.mxu0 %v17_v12  ;;  %85 = vmatpush.msra.mxu1 %v17_v12 }
  0x1c   :  { %43 = vmatpush.msra.mxu0 %v16_v13  ;;  %86 = vmatpush.msra.mxu1 %v16_v13 }
  0x1e   :  { %44 = vmatpush.msra.mxu0 %v15_v14  ;;  %87 = vmatpush.msra.mxu1 %v15_v14 }
  0x20   :  { %45 = vmatpush.msra.mxu0 %v14_v15  ;;  %88 = vmatpush.msra.mxu1 %v14_v15 }
  0x21   :  { %46 = vmatmul.f32.vlgmr.msra.gmra.mxu0 %v12_v16  ;;  %49 = vmatmul.f32.vlgmr.msra.gmra.mxu1 %v13_v17 }
  0x9e   :  { %v47_v18 = vpop.f32.mrf.mxu0  ;;  %v50_v19 = vpop.f32.mrf.mxu1 }
  0x9f   :  { %53 = vst [vmem:[#allocation2] sm:$0xff] %v47_v18 }
  0xa0   :  { %54 = vst [vmem:[#allocation2 + $0x8] sm:$0xff] %v50_v19 }
  0xa1   :  { %67 = dma.vmem_to_hbm [thread:$0]  %s60_s18, 256, %s62_s1, [#allocation3], %s119_s21, %s119_s21, %s120_s22  }
  0xa2   :  { %116 = dma.done.wait [#allocation3], 256  }
  0xa3   :  { %117 = vsyncadd [#allocation3], 4294967040 }
  0xa4   :  { %72 = vsyncpa [#allocation3], 1 }

</bundles_post_ra>
